<compile_context>
chip_gen: v7x
topology: tpu7x:2x2x1
jax: 0.10.0
libtpu: 0.0.40
codegen_flags: <defaults>
</compile_context>

<pallas_src>
import jax
import jax.numpy as jnp
from jax.experimental import pallas as pl
from jax.experimental.pallas import tpu as pltpu


# ------------------------------ helpers ----------------------------------- #

def _round_up(x, m):
    return ((x + m - 1) // m) * m


# ------------------------------ Pallas kernel ------------------------------ #

def _make_fused_kernel(n_layers):
    """Build the fused kernel. refs = (x_ref, w0, b0, w1, b1, ..., o_ref).

    x_ref : (1, C_in, tile_p)  compute dtype (bf16)
    w_i   : (C_out_i, C_in_i)  compute dtype (bf16), BN already folded in
    b_i   : (C_out_i, 1)       float32, BN already folded in
    o_ref : (1, C_out_last, tile_p) float32
    """
    def kernel(*refs):
        x_ref, o_ref = refs[0], refs[-1]
        wb = refs[1:-1]
        h = x_ref[0]                                   # (C_in, tile_p)
        for li in range(n_layers):
            w = wb[2 * li][...]                        # (C_out, C_in)
            b = wb[2 * li + 1][...]                    # (C_out, 1) f32
            # MXU matmul, f32 accumulation.
            y = jnp.dot(w, h, preferred_element_type=jnp.float32)
            y = y + b                                  # f32 epilogue (bias + folded BN)
            if li < n_layers - 1:
                y = jnp.maximum(y, 0.0)                # ReLU on hidden layers
                h = y.astype(w.dtype)                  # bf16 again for next MXU
            else:
                h = y                                  # output layer: no BN / ReLU
        o_ref[0] = h.astype(o_ref.dtype)
    return kernel


# ------------------------------ wrapper ------------------------------------ #

def full_connected_conv2d_forward(x_nchw, folded_params, *, tile_p=512,
                                  compute_dtype=jnp.bfloat16):
    """x_nchw: [bs, fea_in, n_row, n_col] -> [bs, fea_out, n_row, n_col] (eval mode)."""
    bs, c_in, h, w = x_nchw.shape
    hw = h * w

    # Spatial tile: multiple of 128 lanes; pad spatial axis up to a multiple of tile_p.
    tile_p = min(tile_p, _round_up(hw, 128))
    hw_pad = _round_up(hw, tile_p)

    x = x_nchw.reshape(bs, c_in, hw)                   # free reshape (contiguous)
    if hw_pad != hw:
        x = jnp.pad(x, ((0, 0), (0, 0), (0, hw_pad - hw)))
    x = x.astype(compute_dtype)

    n_layers = len(folded_params)
    c_out = folded_params[-1]["w"].shape[0]

    args = [x]
    in_specs = [pl.BlockSpec((1, c_in, tile_p), lambda bi, pi: (bi, 0, pi))]
    for prm in folded_params:
        co, ci = prm["w"].shape
        args.append(prm["w"].astype(compute_dtype))    # tiny, VMEM-resident, constant block
        args.append(prm["b"].astype(jnp.float32))
        in_specs.append(pl.BlockSpec((co, ci), lambda bi, pi: (0, 0)))
        in_specs.append(pl.BlockSpec((co, 1), lambda bi, pi: (0, 0)))

    out = pl.pallas_call(
        _make_fused_kernel(n_layers),
        out_shape=jax.ShapeDtypeStruct((bs, c_out, hw_pad), jnp.float32),
        grid_spec=pltpu.PrefetchScalarGridSpec(
            num_scalar_prefetch=0,
            grid=(bs, hw_pad // tile_p),
            in_specs=in_specs,
            out_specs=pl.BlockSpec((1, c_out, tile_p), lambda bi, pi: (bi, 0, pi)),
        ),
        compiler_params=pltpu.CompilerParams(
            dimension_semantics=("parallel", "parallel")),
    )(*args)

    out = out[:, :, :hw].reshape(bs, c_out, h, w)
    return out


# ------------------------------ parameters --------------------------------- #

def init_params(key, channels, bias=True):
    """Raw parameters mirroring nn.Conv2d(c_in, c_out, 1) + nn.BatchNorm2d shapes."""
    params = []
    n_layers = len(channels)
    for i in range(n_layers - 1):
        c_in, c_out = channels[i], channels[i + 1]
        key, kw, kb, kg, kbe, km, kv = jax.random.split(key, 7)
        bound = 1.0 / (c_in ** 0.5)                    # PyTorch Conv2d default init scale
        layer = dict(
            w=jax.random.uniform(kw, (c_out, c_in), jnp.float32, -bound, bound),
            b=(jax.random.uniform(kb, (c_out,), jnp.float32, -bound, bound)
               if bias else jnp.zeros((c_out,), jnp.float32)),
        )
        if i < n_layers - 2:   # hidden layer: BatchNorm2d (+ ReLU, Dropout2d at eval = id)
            layer["gamma"] = 1.0 + 0.1 * jax.random.normal(kg, (c_out,), jnp.float32)
            layer["beta"] = 0.1 * jax.random.normal(kbe, (c_out,), jnp.float32)
            layer["r_mean"] = 0.1 * jax.random.normal(km, (c_out,), jnp.float32)
            layer["r_var"] = 1.0 + 0.1 * jnp.abs(
                jax.random.normal(kv, (c_out,), jnp.float32))
        params.append(layer)
    return params


def fold_params(params, eps=1e-5):
    """Fold eval-mode BatchNorm into each conv: w' = scale*w, b' = scale*b + shift."""
    folded = []
    for layer in params:
        w, b = layer["w"], layer["b"]
        if "gamma" in layer:
            scale = layer["gamma"] / jnp.sqrt(layer["r_var"] + eps)
            shift = layer["beta"] - layer["r_mean"] * scale
        else:                                          # output layer: no BN
            scale = jnp.ones_like(b)
            shift = jnp.zeros_like(b)
        folded.append(dict(w=w * scale[:, None],                 # (C_out, C_in)
                           b=(b * scale + shift)[:, None]))      # (C_out, 1)
    return folded


# ------------------------------ reference ---------------------------------- #

def reference_forward(x_nchw, folded_params, compute_dtype=jnp.float32):
    """Pure-JAX reference using the same folded weights (optionally same bf16 casts)."""
    bs, c_in, h, w = x_nchw.shape
    fea = x_nchw.reshape(bs, c_in, h * w).astype(compute_dtype)
    n_layers = len(folded_params)
    for li, p in enumerate(folded_params):
        wq = p["w"].astype(compute_dtype)
        y = jnp.einsum("oc,bcp->bop", wq, fea,
                       preferred_element_type=jnp.float32) + p["b"][None]
        if li < n_layers - 1:
            y = jnp.maximum(y, 0.0)
            fea = y.astype(compute_dtype)
        else:
            fea = y
    c_out = fea.shape[1]
    return fea.reshape(bs, c_out, h, w)


if __name__ == "__main__":
    channels = [4, 32, 32, 8]          # [in, hid1, hid2, out]
    bs, h, w = 2, 16, 16               # spatial -> H*W = 256 lanes per batch element

    key = jax.random.PRNGKey(0)
    key, kx = jax.random.split(key)
    x = jax.random.normal(kx, (bs, channels[0], h, w), jnp.float32)

    params = init_params(key, channels, bias=True)
    folded = fold_params(params)

    out = full_connected_conv2d_forward(x, folded)
    out = jax.block_until_ready(out)
    assert out.shape == (bs, channels[-1], h, w), out.shape

    # Tight check against a reference with identical bf16 casting (validates kernel logic).
    ref_bf16 = reference_forward(x, folded, compute_dtype=jnp.bfloat16)
    assert jnp.allclose(out, ref_bf16, atol=1e-2, rtol=1e-2), "mismatch vs bf16 reference"

    # Loose check against the full-f32 eval-mode semantics of the PyTorch module.
    ref_f32 = reference_forward(x, folded, compute_dtype=jnp.float32)
    assert jnp.allclose(out, ref_f32, atol=1e-1, rtol=1e-1), "mismatch vs f32 reference"

    print("KERNEL_OK")
</pallas_src>

<mosaic_0001>
module attributes {stable_mosaic.version = 11 : i64} {
  func.func @kernel(%arg0: i32, %arg1: i32, %arg2: memref<1x4x256xbf16, #tpu.memory_space<vmem>>, %arg3: memref<32x4xbf16, #tpu.memory_space<vmem>>, %arg4: memref<32x1xf32, #tpu.memory_space<vmem>>, %arg5: memref<32x32xbf16, #tpu.memory_space<vmem>>, %arg6: memref<32x1xf32, #tpu.memory_space<vmem>>, %arg7: memref<8x32xbf16, #tpu.memory_space<vmem>>, %arg8: memref<8x1xf32, #tpu.memory_space<vmem>>, %arg9: memref<1x8x256xf32, #tpu.memory_space<vmem>>) attributes {dimension_semantics = [#tpu.dimension_semantics<parallel>, #tpu.dimension_semantics<parallel>], iteration_bounds = array<i64: 2, 1>, scalar_prefetch = 0 : i64, scratch_operands = 0 : i64, tpu.core_type = #tpu.core_type<tc>, window_params = [{transform_indices = @transform_0, window_bounds = array<i64: 1, 4, 256>}, {pipeline_mode = #tpu.pipeline_mode<synchronous>, transform_indices = @transform_1, window_bounds = array<i64: 32, 4>}, {pipeline_mode = #tpu.pipeline_mode<synchronous>, transform_indices = @transform_2, window_bounds = array<i64: 32, 1>}, {pipeline_mode = #tpu.pipeline_mode<synchronous>, transform_indices = @transform_3, window_bounds = array<i64: 32, 32>}, {pipeline_mode = #tpu.pipeline_mode<synchronous>, transform_indices = @transform_4, window_bounds = array<i64: 32, 1>}, {pipeline_mode = #tpu.pipeline_mode<synchronous>, transform_indices = @transform_5, window_bounds = array<i64: 8, 32>}, {pipeline_mode = #tpu.pipeline_mode<synchronous>, transform_indices = @transform_6, window_bounds = array<i64: 8, 1>}, {transform_indices = @transform_7, window_bounds = array<i64: 1, 8, 256>}]} {
    %c0 = arith.constant 0 : index
    %c0_0 = arith.constant 0 : index
    %c0_1 = arith.constant 0 : index
    %0 = vector.load %arg2[%c0, %c0_0, %c0_1] : memref<1x4x256xbf16, #tpu.memory_space<vmem>>, vector<1x4x256xbf16>
    %1 = vector.shape_cast %0 : vector<1x4x256xbf16> to vector<4x256xbf16>
    %c0_2 = arith.constant 0 : index
    %c0_3 = arith.constant 0 : index
    %2 = vector.load %arg3[%c0_2, %c0_3] : memref<32x4xbf16, #tpu.memory_space<vmem>>, vector<32x4xbf16>
    %c0_4 = arith.constant 0 : index
    %c0_5 = arith.constant 0 : index
    %3 = vector.load %arg4[%c0_4, %c0_5] : memref<32x1xf32, #tpu.memory_space<vmem>>, vector<32x1xf32>
    %cst = arith.constant dense<0.000000e+00> : vector<32x256xf32>
    %4 = tpu.matmul %2, %1, %cst {dimension_numbers = #tpu.dot_dimension_numbers<[1], [0], [0], [1], [0, 0, 1, 1], [], []>} : vector<32x4xbf16>, vector<4x256xbf16>, vector<32x256xf32> -> vector<32x256xf32>
    %5 = vector.broadcast %3 : vector<32x1xf32> to vector<32x256xf32>
    %6 = arith.addf %4, %5 : vector<32x256xf32>
    %cst_6 = arith.constant 0.000000e+00 : f32
    %7 = vector.broadcast %cst_6 : f32 to vector<32x256xf32>
    %8 = arith.maximumf %6, %7 : vector<32x256xf32>
    %9 = arith.truncf %8 : vector<32x256xf32> to vector<32x256xbf16>
    %c0_7 = arith.constant 0 : index
    %c0_8 = arith.constant 0 : index
    %10 = vector.load %arg5[%c0_7, %c0_8] : memref<32x32xbf16, #tpu.memory_space<vmem>>, vector<32x32xbf16>
    %c0_9 = arith.constant 0 : index
    %c0_10 = arith.constant 0 : index
    %11 = vector.load %arg6[%c0_9, %c0_10] : memref<32x1xf32, #tpu.memory_space<vmem>>, vector<32x1xf32>
    %cst_11 = arith.constant dense<0.000000e+00> : vector<32x256xf32>
    %12 = tpu.matmul %10, %9, %cst_11 {dimension_numbers = #tpu.dot_dimension_numbers<[1], [0], [0], [1], [0, 0, 1, 1], [], []>} : vector<32x32xbf16>, vector<32x256xbf16>, vector<32x256xf32> -> vector<32x256xf32>
    %13 = vector.broadcast %11 : vector<32x1xf32> to vector<32x256xf32>
    %14 = arith.addf %12, %13 : vector<32x256xf32>
    %cst_12 = arith.constant 0.000000e+00 : f32
    %15 = vector.broadcast %cst_12 : f32 to vector<32x256xf32>
    %16 = arith.maximumf %14, %15 : vector<32x256xf32>
    %17 = arith.truncf %16 : vector<32x256xf32> to vector<32x256xbf16>
    %c0_13 = arith.constant 0 : index
    %c0_14 = arith.constant 0 : index
    %18 = vector.load %arg7[%c0_13, %c0_14] : memref<8x32xbf16, #tpu.memory_space<vmem>>, vector<8x32xbf16>
    %c0_15 = arith.constant 0 : index
    %c0_16 = arith.constant 0 : index
    %19 = vector.load %arg8[%c0_15, %c0_16] : memref<8x1xf32, #tpu.memory_space<vmem>>, vector<8x1xf32>
    %cst_17 = arith.constant dense<0.000000e+00> : vector<8x256xf32>
    %20 = tpu.matmul %18, %17, %cst_17 {dimension_numbers = #tpu.dot_dimension_numbers<[1], [0], [0], [1], [0, 0, 1, 1], [], []>} : vector<8x32xbf16>, vector<32x256xbf16>, vector<8x256xf32> -> vector<8x256xf32>
    %21 = vector.broadcast %19 : vector<8x1xf32> to vector<8x256xf32>
    %22 = arith.addf %20, %21 : vector<8x256xf32>
    %c0_18 = arith.constant 0 : index
    %c0_19 = arith.constant 0 : index
    %c0_20 = arith.constant 0 : index
    %23 = vector.load %arg9[%c0_18, %c0_19, %c0_20] : memref<1x8x256xf32, #tpu.memory_space<vmem>>, vector<1x8x256xf32>
    %24 = vector.shape_cast %23 : vector<1x8x256xf32> to vector<8x256xf32>
    %25 = vector.shape_cast %22 : vector<8x256xf32> to vector<1x8x256xf32>
    tpu.vector_store %arg9[%c0_18, %c0_19, %c0_20], %25 {strides = array<i32>} : memref<1x8x256xf32, #tpu.memory_space<vmem>>, vector<1x8x256xf32>,
    return
  }
  func.func @transform_0(%arg0: i32, %arg1: i32) -> (i32, i32, i32) {
    %c0_i32 = arith.constant 0 : i32
    %c0_i32_0 = arith.constant 0 : i32
    return %arg0, %c0_i32, %arg1 : i32, i32, i32
  }
  func.func @transform_1(%arg0: i32, %arg1: i32) -> (i32, i32) {
    %c0_i32 = arith.constant 0 : i32
    %c0_i32_0 = arith.constant 0 : i32
    %c0_i32_1 = arith.constant 0 : i32
    return %c0_i32, %c0_i32_0 : i32, i32
  }
  func.func @transform_2(%arg0: i32, %arg1: i32) -> (i32, i32) {
    %c0_i32 = arith.constant 0 : i32
    %c0_i32_0 = arith.constant 0 : i32
    %c0_i32_1 = arith.constant 0 : i32
    return %c0_i32, %c0_i32_0 : i32, i32
  }
  func.func @transform_3(%arg0: i32, %arg1: i32) -> (i32, i32) {
    %c0_i32 = arith.constant 0 : i32
    %c0_i32_0 = arith.constant 0 : i32
    %c0_i32_1 = arith.constant 0 : i32
    return %c0_i32, %c0_i32_0 : i32, i32
  }
  func.func @transform_4(%arg0: i32, %arg1: i32) -> (i32, i32) {
    %c0_i32 = arith.constant 0 : i32
    %c0_i32_0 = arith.constant 0 : i32
    %c0_i32_1 = arith.constant 0 : i32
    return %c0_i32, %c0_i32_0 : i32, i32
  }
  func.func @transform_5(%arg0: i32, %arg1: i32) -> (i32, i32) {
    %c0_i32 = arith.constant 0 : i32
    %c0_i32_0 = arith.constant 0 : i32
    %c0_i32_1 = arith.constant 0 : i32
    return %c0_i32, %c0_i32_0 : i32, i32
  }
  func.func @transform_6(%arg0: i32, %arg1: i32) -> (i32, i32) {
    %c0_i32 = arith.constant 0 : i32
    %c0_i32_0 = arith.constant 0 : i32
    %c0_i32_1 = arith.constant 0 : i32
    return %c0_i32, %c0_i32_0 : i32, i32
  }
  func.func @transform_7(%arg0: i32, %arg1: i32) -> (i32, i32, i32) {
    %c0_i32 = arith.constant 0 : i32
    %c0_i32_0 = arith.constant 0 : i32
    return %arg0, %c0_i32, %arg1 : i32, i32, i32
  }
}

</mosaic_0001>

<bundles_post_ra>
// kernel: tpu_custom_call.1
= control target key start
LH: loop header
LB: loop body
LE: loop exit
PB: predicated region body
PF: predicated region fallthrough
CT: control target
= control target key end

     0   :  { %12 = vsyncpa [#allocation3], 0  ;;  %s1066_s0 = inlined_call_operand.vmem [shape: bf16[2,4,256], index: 0, kind: input, shape index: {}]   ;;  %s1067_s1 = inlined_call_operand.vmem [shape: bf16[32,4], index: 1, kind: input, shape index: {}]   ;;  %s1068_s2 = inlined_call_operand.vmem [shape: f32[32,1], index: 2, kind: input, shape index: {}]   ;;  %s1069_s3 = inlined_call_operand.vmem [shape: bf16[32,32], index: 3, kind: input, shape index: {}]   ;;  %s1070_s4 = inlined_call_operand.vmem [shape: f32[32,1], index: 4, kind: input, shape index: {}]   ;;  %s1071_s5 = inlined_call_operand.vmem [shape: bf16[8,32], index: 5, kind: input, shape index: {}]   ;;  %s1072_s6 = inlined_call_operand.vmem [shape: f32[8,1], index: 6, kind: input, shape index: {}]   ;;  %s1073_s7 = inlined_call_operand.hbm [shape: f32[2,8,256], index: 7, kind: output, shape index: {}]  }
   0x1   :  { %14 = vsyncpa [#allocation3 + $0x1], 0  ;;  %s902_s24 = smov 0   ;;  %s904_s25 = smov 0  }
   0x2   :  { %s906_s26 = smov 0   ;;  %s908_s27 = smov 0  }
   0x3   :  { %s910_s28 = smov 0   ;;  %s912_s29 = smov 0  }
   0x4 LB: > { %s692_s30 = sadd.s32 4294967295, %s858_s29   ;;  %s693_s8 = sadd.s32 4294967294, %s858_s29   ;;  %s858_s29 = sphi %s912_s29, %s20_s29   ;;  %s854_s28 = sphi %s910_s28, %s1080_s28   ;;  %s850_s27 = sphi %s908_s27, %s1079_s27   ;;  %s846_s26 = sphi %s906_s26, %s1078_s26   ;;  %s842_s25 = sphi %s904_s25, %s1077_s25   ;;  %s838_s24 = sphi %s902_s24, %s1076_s24  }
   0x5   : > { %s32_s9 = sadd.s32 1, %s854_s28  ;;  %s195_s10 = sadd.s32 1, %s846_s26 }
   0x6   : > { %p34_p0 = scmp.ge.s32.totalorder %s32_s9, 2  ;;  %p205_p1 = scmp.ne.s32.totalorder %s846_s26, %s842_s25 }
   0x7   : > { %p206_p2 = scmp.eq.s32.totalorder %s692_s30, 1  ;;  %p211_p3 = scmp.ne.s32.totalorder %s842_s25, %s838_s24 }
   0x8   : > { %s1082_s9 = smov (%p34_p0, %s32_s9), 0  ;;  %p212_p5 = scmp.eq.s32.totalorder %s693_s8, 1 }
   0x9   : > { %p942_p4 = por %p206_p2, %p205_p1  ;;  %s190_s12 = ssub.s32 %s854_s28, %s1082_s9 }
   0xa   : > { %p696_p6 = scmp.ge.s32.totalorder %s858_s29, 1  ;;  %p193_p7 = scmp.eq.s32.totalorder %s190_s12, 0 }
   0xb   : > { %p949_p8 = por %p212_p5, %p211_p3  ;;  %p261_p9 = scmp.lt.s32.totalorder %s858_s29, 3 }
   0xc   : > { %s955_s14 = scalar_select %p193_p7, %s846_s26, %s195_s10  }
   0xd   : > { %p262_p10 = pnand %p696_p6, %p261_p9 }
   0xe   : > { %p298_p11 = scmp.lt.s32.totalorder (!%p262_p10), %s850_s27, 1  ;;  %v860_v0 = vmov (!%p262_p10), 0   ;;  %v314_v1 = vld [vmem:[%s1068_s2] sm:$0xff] (!%p262_p10)  ;;  %v316_v2 = vld [vmem:[%s1068_s2 + $0x10] sm:$0xff] (!%p262_p10)  ;;  %vm364_vm0 = vcmask (!%p262_p10), 1041408   ;;  %v315_v3 = vld [vmem:[%s1068_s2 + $0x8] sm:$0xff] (!%p262_p10) }
   0xf   : > { %265 = sbr.rel (%p262_p10) target bundleno = 728 (0x2d8), region = 48  ;;  %403 = vmatprep.mubr.bf16.mxu0 (!%p262_p10), %v860_v0  ;;  %774 = vset.pattern.permute.xlu0 (!%p262_p10), %v860_v0  ;;  %v317_v4 = vld [vmem:[%s1068_s2 + $0x18] sm:$0xff] (!%p262_p10)  ;;  %v440_v8 = vld [vmem:[%s1070_s4] sm:$0xff] (!%p262_p10)  ;;  %v441_v10 = vld [vmem:[%s1070_s4 + $0x8] sm:$0xff] (!%p262_p10)  ;;  %vm357_vm1 = vcmask (!%p262_p10), 31744   ;;  %vm474_vm2 = vcmask (!%p262_p10), 261120  }
  0x10   : > { %775 = vset.pattern.permute.xlu1 (!%p262_p10), %v860_v0  ;;  %513 = vmatprep.mubr.bf16.mxu1 (!%p262_p10), %v860_v0  ;;  %v776_v9 = vld [vmem:[%s1067_s1] sm:$0xff] (!%p262_p10)   ;;  %v442_v11 = vld [vmem:[%s1070_s4 + $0x10] sm:$0xff] (!%p262_p10)  ;;  %v443_v12 = vld [vmem:[%s1070_s4 + $0x18] sm:$0xff] (!%p262_p10)  ;;  %s294_s22 = sand.u32 (!%p262_p10), 1, %s842_s25   ;;  %s717_s30 = sshll.u32 (!%p262_p10), %s850_s27, 8 }
  0x11   : > { %320 = vperm.xlu0 (!%p262_p10), %774, %v314_v1   ;;  %330 = vperm.xlu1 (!%p262_p10), %775, %v316_v2   ;;  %v547_v13 = vld [vmem:[%s1072_s6] sm:$0xff] (!%p262_p10)  ;;  %v777_v14 = vld [vmem:[%s1067_s1 + $0x8] sm:$0xff] (!%p262_p10)   ;;  %s697_s23 = sshll.u32 (!%p262_p10), %s294_s22, 4  ;;  %s861_s18 = smov (!%p262_p10), [#allocation2]  }
  0x12   : > { %v778_v47 = vld [vmem:[%s1069_s3] sm:$0xff] (!%p262_p10)   ;;  %v779_v48 = vld [vmem:[%s1069_s3 + $0x8] sm:$0xff] (!%p262_p10)   ;;  %s784_s19 = sshll.u32 (!%p262_p10), %s861_s18, 4  ;;  %s785_s19 = int_to_ptr.vmem [resolvable:$false] %s784_s19 }
  0x15   : > { %325 = vperm.xlu0 (!%p262_p10), %774, %v315_v3   ;;  %335 = vperm.xlu1 (!%p262_p10), %775, %v317_v4  }
  0x16   : > { %s299_s15 = scalar_select %p298_p11, %s850_s27, 1 }
  0x17   : > { %s600_s27 = scalar_lea.sflag [#allocation3], %s294_s22 }
  0x18   : > { %s716_s20 = sshll.u32 %s299_s15, 2  ;;  %s1019_s15 = scalar_lea.hbm %s1073_s7, %s717_s30 }
  0x19   : > { %s305_s8 = scalar_lea.vmem %s1066_s0, %s716_s20  ;;  %446 = vperm.xlu0 %774, %v440_v8   ;;  %451 = vperm.xlu1 %775, %v441_v10   ;;  %s786_s20 = scalar_lea.vmem %s785_s19, 512 }
  0x1a   : > { %v702_v5 = vld.sshfl [vmem:[%s305_s8] sm:$0x33 pattern:$0x76325410]  ;;  %s296_s8 = scalar_lea.vmem [#allocation2], %s697_s23 }
  0x1b   : > { %v356_v6 = vcombine.high %v702_v5, %v702_v5  ;;  %v366_v7 = vsel %vm364_vm0, %v702_v5, 0  ;;  %s616_s10 = sshll.u32 %s296_s8, 4  ;;  %s1021_s10 = int_to_ptr.vmem [resolvable:$true] %s616_s10 }
  0x1c   : > { %s780_s17 = scalar_lea.vmem %s1021_s10, 256  ;;  %p787_p1 = scmp.lt.s32.totalorder %s1021_s10, %s785_s19 }
  0x1d   : > { %703 = vmatprep.subr.msk.bf16.mxu0 %vm364_vm0, %v356_v6  ;;  %456 = vperm.xlu0 %774, %v442_v11   ;;  %p781_p12 = scmp.ne.s32.totalorder %s1021_s10, %s780_s17  ;;  %p788_p2 = scmp.lt.s32.totalorder %s786_s20, %s780_s17 }
  0x1e   : > { %372 = vmatpush1.bf16.msra.mxu0 %v366_v7  ;;  %461 = vperm.xlu1 %775, %v443_v12  }
  0x1f   : > { %p782_p13 = pnand %p781_p12, %p942_p4  ;;  %p789_p3 = por %p788_p2, %p787_p1 }
  0x21   : > { %704 = vmatmul.mubr.msk.bf16.vlgmr.msra.gmra.mrb[0].mxu0 %vm357_vm1, %v776_v9  ;;  %550 = vperm.xlu0 %774, %v547_v13   ;;  %p783_p0 = pneg %p782_p13 }
  0x22   : > { %413 = vmatprep.mubr.bf16.mxu0 %v860_v0 }
  0x23   : > { %p790_p5 = pnand %p789_p3, %p783_p0 }
  0x29   : > { %705 = vmatmul.mubr.msk.bf16.gmra.mrb[4].mxu0 %vm357_vm1, %v777_v14 }
  0x2a   : > { %588 = vmatprep.mubr.bf16.mxu0 %v860_v0 }
  0x90   : > { %v321_v15 = vpop.permute.xlu0 %320  ;;  %v331_v24 = vpop.permute.xlu1 %330 }
  0x94   : > { %v326_v19 = vpop.permute.xlu0 %325  ;;  %v336_v35 = vpop.permute.xlu1 %335 }
  0x98   : > { %v447_v49 = vpop.permute.xlu0 %446  ;;  %v452_v53 = vpop.permute.xlu1 %451 }
  0x9d   : > { %v462_v5 = vpop.permute.xlu1 %461 }
  0xf4   : > { %v405_v16 = vpop.f32.mrb[0].mxu0 }
  0xf5   : > { %v406_v17 = vadd.f32 %v405_v16, %v321_v15  ;;  %v407_v18 = vpop.f32.mrb[1].mxu0 }
  0xf6   : > { %v408_v20 = vadd.f32 %v407_v18, %v321_v15  ;;  %v409_v21 = vpop.f32.mrb[2].mxu0 }
  0xf7   : > { %v410_v22 = vadd.f32 %v409_v21, %v326_v19  ;;  %v411_v23 = vpop.f32.mrb[3].mxu0  ;;  %v424_v26 = vmax.f32 %v406_v17, 0.0  ;;  %v546_v17 = vld [vmem:[%s1071_s5] sm:$0xf] }
  0xf8   : > { %v412_v25 = vadd.f32 %v411_v23, %v326_v19  ;;  %v425_v28 = vmax.f32 %v408_v20, 0.0 }
  0xf9   : > { %v426_v27 = vmax.f32 %v410_v22, 0.0 }
  0xfa   : > { %v427_v29 = vmax.f32 %v412_v25, 0.0 }
  0xfb   : > { %v432_v30 = vpack.c.bf16 %v426_v27, %v424_v26 }
  0xfc   : > { %v415_v31 = vpop.f32.mrb[4].mxu0  ;;  %v433_v32 = vpack.c.bf16 %v427_v29, %v425_v28 }
  0xfd   : > { %v416_v33 = vadd.f32 %v415_v31, %v331_v24  ;;  %v417_v34 = vpop.f32.mrb[5].mxu0 }
  0xfe   : > { %v418_v36 = vadd.f32 %v417_v34, %v331_v24  ;;  %v419_v37 = vpop.f32.mrb[6].mxu0  ;;  %481 = vmatprep.subr.bf16.mxu1 %v433_v32 }
  0xff   : > { %v420_v38 = vadd.f32 %v419_v37, %v336_v35  ;;  %v421_v39 = vpop.f32.mrb[7].mxu0  ;;  %482 = vmatpush1.bf16.msra.mxu1 %v432_v30  ;;  %v428_v41 = vmax.f32 %v416_v33, 0.0 }
 0x100   : > { %v422_v40 = vadd.f32 %v421_v39, %v336_v35  ;;  %v429_v43 = vmax.f32 %v418_v36, 0.0 }
 0x101   : > { %v430_v42 = vmax.f32 %v420_v38, 0.0 }
 0x102   : > { %v431_v44 = vmax.f32 %v422_v40, 0.0 }
 0x103   : > { %v434_v45 = vpack.c.bf16 %v430_v42, %v428_v41 }
 0x104   : > { %v435_v46 = vpack.c.bf16 %v431_v44, %v429_v43 }
 0x106   : > { %483 = vmatprep.subr.bf16.mxu1 %v435_v46 }
 0x107   : > { %484 = vmatpush1.bf16.msra.mxu1 %v434_v45 }
 0x10a   : > { %708 = vmatmul.mubr.msk.bf16.vlgmr.msra.gmra.mrb[0].mxu1 %vm474_vm2, %v778_v47 }
 0x10b   : > { %523 = vmatprep.mubr.bf16.mxu1 %v860_v0  ;;  %v457_v0 = vpop.permute.xlu0 %456 }
 0x10f   : > { %v551_v18 = vpop.permute.xlu0 %550 }
 0x112   : > { %709 = vmatmul.mubr.msk.bf16.gmra.mrb[4].mxu1 %vm474_vm2, %v779_v48 }
 0x1dd   : > { %v515_v50 = vpop.f32.mrb[0].mxu1 }
 0x1de   : > { %v516_v51 = vadd.f32 %v515_v50, %v447_v49  ;;  %v517_v52 = vpop.f32.mrb[1].mxu1 }
 0x1df   : > { %v518_v54 = vadd.f32 %v517_v52, %v447_v49  ;;  %v519_v55 = vpop.f32.mrb[2].mxu1 }
 0x1e0   : > { %v520_v56 = vadd.f32 %v519_v55, %v452_v53  ;;  %v521_v57 = vpop.f32.mrb[3].mxu1  ;;  %v534_v59 = vmax.f32 %v516_v51, 0.0 }
 0x1e1   : > { %v522_v58 = vadd.f32 %v521_v57, %v452_v53  ;;  %v535_v61 = vmax.f32 %v518_v54, 0.0 }
 0x1e2   : > { %v536_v60 = vmax.f32 %v520_v56, 0.0 }
 0x1e3   : > { %v537_v62 = vmax.f32 %v522_v58, 0.0 }
 0x1e4   : > { %v542_v63 = vpack.c.bf16 %v536_v60, %v534_v59 }
 0x1e5   : > { %v543_v1 = vpack.c.bf16 %v537_v62, %v535_v61  ;;  %v525_v2 = vpop.f32.mrb[4].mxu1 }
 0x1e6   : > { %v526_v3 = vadd.f32 %v525_v2, %v457_v0  ;;  %v527_v4 = vpop.f32.mrb[5].mxu1 }
 0x1e7   : > { %v528_v6 = vadd.f32 %v527_v4, %v457_v0  ;;  %v529_v7 = vpop.f32.mrb[6].mxu1  ;;  %556 = vmatprep.subr.bf16.mxu0 %v543_v1 }
 0x1e8   : > { %v530_v8 = vadd.f32 %v529_v7, %v462_v5  ;;  %v531_v9 = vpop.f32.mrb[7].mxu1  ;;  %557 = vmatpush1.bf16.msra.mxu0 %v542_v63  ;;  %v538_v11 = vmax.f32 %v526_v3, 0.0 }
 0x1e9   : > { %v532_v10 = vadd.f32 %v531_v9, %v462_v5  ;;  %v539_v13 = vmax.f32 %v528_v6, 0.0 }
 0x1ea   : > { %v540_v12 = vmax.f32 %v530_v8, 0.0 }
 0x1eb   : > { %v541_v14 = vmax.f32 %v532_v10, 0.0 }
 0x1ec   : > { %v544_v15 = vpack.c.bf16 %v540_v12, %v538_v11 }
 0x1ed   : > { %v545_v16 = vpack.c.bf16 %v541_v14, %v539_v13 }
 0x1ef   : > { %558 = vmatprep.subr.bf16.mxu0 %v545_v16 }
 0x1f0   : > { %559 = vmatpush1.bf16.msra.mxu0 %v544_v15 }
 0x1f3   : > { %710 = vmatmul.mubr.msk.bf16.vlgmr.msra.gmra.mrb[8].mxu0 %vm474_vm2, %v546_v17 }
 0x2c6   : > { %v590_v19 = vpop.f32.mrb[8].mxu0 }
 0x2c7   : > { %v591_v20 = vadd.f32 %v590_v19, %v551_v18  ;;  %v592_v21 = vpop.f32.mrb[9].mxu0 }
 0x2c8   : > { %v593_v22 = vadd.f32 %v592_v21, %v551_v18  ;;  %v594_v23 = vpop.f32.mrb[10].mxu0 }
 0x2c9   : > { %597 = vst [vmem:[%s296_s8] sm:$0xff] %v591_v20  ;;  %v595_v24 = vpop.f32.mrb[11].mxu0 }
 0x2ca   : > { %598 = vst [vmem:[%s296_s8 + $0x8] sm:$0xff] %v593_v22 }
 0x2cb   : > { %793 = shalt.err (!%p790_p5)
}
 0x2cc   : > { %s794_s21 = scalar_lea.hbm %s1019_s15, 256  ;;  %s798_s30 = scalar_lea.hbm %s1073_s7, 512 }
 0x2cd   : > { %p795_p6 = scmp.ne.s32.totalorder %s1019_s15, %s794_s21  ;;  %p799_p10 = scmp.lt.u32.totalorder %s1019_s15, %s1073_s7 }
 0x2ce   : > { %p800_p11 = scmp.lt.u32.totalorder %s798_s30, %s794_s21  ;;  %p802_p13 = scmp.lt.u32.totalorder %s794_s21, %s1019_s15 }
 0x2cf   : > { %p796_p7 = pnand %p795_p6, %p942_p4 }
 0x2d0   : > { %p801_p12 = por %p800_p11, %p799_p10 }
 0x2d1   : > { %p797_p9 = pneg %p796_p7 }
 0x2d2   : > { %p803_p0 = por %p802_p13, %p801_p12 }
 0x2d4   : > { %p804_p1 = pnand %p803_p0, %p797_p9 }
 0x2d6   : > { %807 = shalt.err (!%p804_p1)
}
 0x2d7   : > { %718 = dma.vmem_to_hbm [thread:$0]  (%p942_p4), %s1021_s10, 256, %s1019_s15, %s600_s27  }
 0x2d8 PF: > { %p724_p2 = scmp.ge.s32.totalorder %s858_s29, 2  ;;  %s628_s16 = sand.u32 1, %s838_s24  }
 0x2d9   : > { %s629_s17 = scalar_lea.sflag [#allocation3], %s628_s16 }
 0x2da   : > { %p721_p3 = pnand %p724_p2, %p949_p8 }
 0x2dc   : > { %833 = dma.done.wait (!%p721_p3), %s629_s17, 256  }
 0x2dd   : > { %835 = vsyncadd (!%p721_p3), %s629_s17, 4294967040  ;;  %s20_s29 = sadd.s32 1, %s858_s29   ;;  %s1076_s24 = smov %s842_s25 }
 0x2de   : > { %p17_p5 = scmp.ge.s32.totalorder %s20_s29, 4   ;;  %s1077_s25 = smov %s846_s26 }
 0x2df   : > { %s1078_s26 = smov %s955_s14  ;;  %s1079_s27 = smov %s854_s28 }
 0x2e0   : > { %s1080_s28 = smov %s1082_s9  ;;  %19 = sbr.rel (!%p17_p5) target bundleno = 4 (0x4), region = 83 }
 0x2e7   :  { %634 = vsyncpa [#allocation3], 1 }
 0x2e8   :  { %636 = vsyncpa [#allocation3 + $0x1], 1 }

</bundles_post_ra>
